<compile_context>
chip_gen: v5e
topology: v5e:2x2
jax: 0.10.0
libtpu: 0.0.40
codegen_flags: <defaults>
</compile_context>

<pallas_src>
import jax
import jax.numpy as jnp
from jax.experimental import pallas as pl
from jax.experimental.pallas import tpu as pltpu

_HIDDEN = 256
_LANE = 128
_SUBLANE = 8


def _round_up(x, m):
    return ((x + m - 1) // m) * m


def projection_head_kernel(x_ref, w1_ref, b1_ref, w2_ref, b2_ref, o_ref):
    # fc1: bf16 x (streamed) * bf16 w1 on the MXU, f32 accumulation; bias + ReLU in f32.
    h = jnp.dot(x_ref[...], w1_ref[...], preferred_element_type=jnp.float32)
    h = jnp.maximum(h + b1_ref[...], 0.0)                       # (tb, 256) f32
    # fc2: downcast activations to bf16 for the MXU, accumulate in f32.
    y = jnp.dot(h.astype(jnp.bfloat16), w2_ref[...],
                preferred_element_type=jnp.float32)
    o_ref[...] = (y + b2_ref[...]).astype(o_ref.dtype)          # lane-dense store


def projection_head(x, w1, b1, w2, b2, *, block_b=1024,
                    out_dtype=jnp.float32, slice_output=True):
    """relu(x @ w1 + b1) @ w2 + b2.

    x : (B, in_dim)
    w1: (in_dim, 256), b1: (256,), w2: (256, out_dim), b2: (out_dim,)
    Returns (B, out_dim) in out_dtype (or (B, round_up(out_dim,128)) if slice_output=False).
    """
    B, in_dim = x.shape
    hidden = w1.shape[1]
    out_dim = w2.shape[1]

    k_pad = _round_up(in_dim, _LANE)
    n_pad = _round_up(out_dim, _LANE)

    # Batch tile: no batch padding. grid = cdiv(B, tb); the trailing partial block reads
    # garbage rows (never mixed into valid rows) and its OOB stores are dropped.
    tb = min(block_b, _round_up(B, _SUBLANE))

    # VMEM guard: 2 double-buffered x tiles + 2 out tiles + resident weights must stay
    # comfortably under every generation's scoped default (16 MiB on v5e is the tightest).
    out_elt = jnp.dtype(out_dtype).itemsize
    w_bytes = (k_pad * hidden + hidden * n_pad) * 2 + (hidden + n_pad) * 4
    budget = 12 * 1024 * 1024
    while tb > _SUBLANE and (2 * tb * k_pad * 2 + 2 * tb * n_pad * out_elt + w_bytes) > budget:
        tb = max(_SUBLANE, _round_up(tb // 2, _SUBLANE))

    # x: zero-pad K to a lane multiple (keeps the reduction exact) and stream in bf16.
    # Skip whatever work is unnecessary (no pad if lane-aligned, no cast if already bf16).
    if k_pad != in_dim:
        x_p = jnp.pad(x, ((0, 0), (0, k_pad - in_dim))).astype(jnp.bfloat16)
    elif x.dtype != jnp.bfloat16:
        x_p = x.astype(jnp.bfloat16)
    else:
        x_p = x

    w1_p = (w1 if k_pad == in_dim
            else jnp.pad(w1, ((0, k_pad - in_dim), (0, 0)))).astype(jnp.bfloat16)
    w2_p = (w2 if n_pad == out_dim
            else jnp.pad(w2, ((0, 0), (0, n_pad - out_dim)))).astype(jnp.bfloat16)
    b1_p = b1.reshape(1, hidden).astype(jnp.float32)
    b2_p = (b2 if n_pad == out_dim
            else jnp.pad(b2, (0, n_pad - out_dim))).reshape(1, n_pad).astype(jnp.float32)

    grid = (pl.cdiv(B, tb),)

    flops = 2 * B * (k_pad * hidden + hidden * n_pad)
    bytes_accessed = (x_p.size * 2 + w1_p.size * 2 + w2_p.size * 2
                      + b1_p.size * 4 + b2_p.size * 4 + B * n_pad * out_elt)

    out = pl.pallas_call(
        projection_head_kernel,
        out_shape=jax.ShapeDtypeStruct((B, n_pad), out_dtype),
        grid=grid,
        in_specs=[
            pl.BlockSpec((tb, k_pad), lambda i: (i, 0)),        # x tile streams (bf16)
            pl.BlockSpec((k_pad, hidden), lambda i: (0, 0)),    # weights resident in VMEM
            pl.BlockSpec((1, hidden), lambda i: (0, 0)),
            pl.BlockSpec((hidden, n_pad), lambda i: (0, 0)),
            pl.BlockSpec((1, n_pad), lambda i: (0, 0)),
        ],
        out_specs=pl.BlockSpec((tb, n_pad), lambda i: (i, 0)),
        compiler_params=pltpu.CompilerParams(
            # 'parallel' lets v7x shard grid steps across its 2 TensorCores when grid >= 2.
            dimension_semantics=("parallel",),
        ),
        cost_estimate=pl.CostEstimate(
            flops=flops, transcendentals=0, bytes_accessed=bytes_accessed),
    )(x_p, w1_p, b1_p, w2_p, b2_p)

    if slice_output and n_pad != out_dim:
        out = out[:, :out_dim]
    return out


def init_params(key, in_dim, out_dim, hidden=_HIDDEN, dtype=jnp.float32):
    """Deterministic init mimicking torch.nn.Linear's U(-1/sqrt(fan_in), 1/sqrt(fan_in))."""
    k1, k2, k3, k4 = jax.random.split(key, 4)
    lim1 = 1.0 / jnp.sqrt(in_dim)
    lim2 = 1.0 / jnp.sqrt(hidden)
    # stored already transposed: (in, out)
    w1 = jax.random.uniform(k1, (in_dim, hidden), dtype, -lim1, lim1)
    b1 = jax.random.uniform(k2, (hidden,), dtype, -lim1, lim1)
    w2 = jax.random.uniform(k3, (hidden, out_dim), dtype, -lim2, lim2)
    b2 = jax.random.uniform(k4, (out_dim,), dtype, -lim2, lim2)
    return w1, b1, w2, b2


def _ref_bf16(x, w1, b1, w2, b2):
    # Reference with the same bf16-on-MXU / f32-accumulate recipe as the kernel.
    h = jnp.dot(x.astype(jnp.bfloat16), w1.astype(jnp.bfloat16),
                preferred_element_type=jnp.float32) + b1
    h = jnp.maximum(h, 0.0)
    return jnp.dot(h.astype(jnp.bfloat16), w2.astype(jnp.bfloat16),
                   preferred_element_type=jnp.float32) + b2


if __name__ == "__main__":
    key = jax.random.PRNGKey(0)
    kx, kp, kx2 = jax.random.split(key, 3)

    # Small shapes consistent with the module.
    B, in_dim, out_dim = 8, 32, 16
    x = jax.random.normal(kx, (B, in_dim), jnp.float32)
    w1, b1, w2, b2 = init_params(kp, in_dim, out_dim)

    out = projection_head(x, w1, b1, w2, b2)
    out = jax.block_until_ready(out)
    assert out.shape == (B, out_dim)

    # Reference 1: same bf16-MXU recipe (tight check).
    ref_bf = _ref_bf16(x, w1, b1, w2, b2)
    assert jnp.allclose(out, ref_bf, atol=1e-3, rtol=1e-3)

    # Reference 2: pure f32 PyTorch-equivalent math (loose check — bf16 MXU contract).
    ref_f32 = jnp.maximum(x @ w1 + b1, 0.0) @ w2 + b2
    assert jnp.allclose(out, ref_f32, atol=2e-2, rtol=2e-2)

    # Second check: multi-step grid with a trailing partial batch block (no batch padding).
    B2 = 24
    x2 = jax.random.normal(kx2, (B2, in_dim), jnp.float32)
    out2 = jax.block_until_ready(projection_head(x2, w1, b1, w2, b2, block_b=16))
    assert out2.shape == (B2, out_dim)
    assert jnp.allclose(out2, _ref_bf16(x2, w1, b1, w2, b2), atol=1e-3, rtol=1e-3)

    print("KERNEL_OK")
</pallas_src>

<mosaic_0001>
module attributes {stable_mosaic.version = 11 : i64} {
  func.func @projection_head_kernel(%arg0: i32, %arg1: memref<8x128xbf16, #tpu.memory_space<vmem>>, %arg2: memref<128x256xbf16, #tpu.memory_space<vmem>>, %arg3: memref<1x256xf32, #tpu.memory_space<vmem>>, %arg4: memref<256x128xbf16, #tpu.memory_space<vmem>>, %arg5: memref<1x128xf32, #tpu.memory_space<vmem>>, %arg6: memref<8x128xf32, #tpu.memory_space<vmem>>) attributes {dimension_semantics = [#tpu.dimension_semantics<parallel>], iteration_bounds = array<i64: 1>, scalar_prefetch = 0 : i64, scratch_operands = 0 : i64, tpu.core_type = #tpu.core_type<tc>, window_params = [{transform_indices = @transform_0, window_bounds = array<i64: 8, 128>}, {pipeline_mode = #tpu.pipeline_mode<synchronous>, transform_indices = @transform_1, window_bounds = array<i64: 128, 256>}, {pipeline_mode = #tpu.pipeline_mode<synchronous>, transform_indices = @transform_2, window_bounds = array<i64: 1, 256>}, {pipeline_mode = #tpu.pipeline_mode<synchronous>, transform_indices = @transform_3, window_bounds = array<i64: 256, 128>}, {pipeline_mode = #tpu.pipeline_mode<synchronous>, transform_indices = @transform_4, window_bounds = array<i64: 1, 128>}, {transform_indices = @transform_5, window_bounds = array<i64: 8, 128>}]} {
    %c0 = arith.constant 0 : index
    %c0_0 = arith.constant 0 : index
    %0 = vector.load %arg1[%c0, %c0_0] : memref<8x128xbf16, #tpu.memory_space<vmem>>, vector<8x128xbf16>
    %c0_1 = arith.constant 0 : index
    %c0_2 = arith.constant 0 : index
    %1 = vector.load %arg2[%c0_1, %c0_2] : memref<128x256xbf16, #tpu.memory_space<vmem>>, vector<128x256xbf16>
    %cst = arith.constant dense<0.000000e+00> : vector<8x256xf32>
    %2 = tpu.matmul %0, %1, %cst {dimension_numbers = #tpu.dot_dimension_numbers<[1], [0], [0], [1], [0, 0, 1, 1], [], []>} : vector<8x128xbf16>, vector<128x256xbf16>, vector<8x256xf32> -> vector<8x256xf32>
    %c0_3 = arith.constant 0 : index
    %c0_4 = arith.constant 0 : index
    %3 = vector.load %arg3[%c0_3, %c0_4] : memref<1x256xf32, #tpu.memory_space<vmem>>, vector<1x256xf32>
    %4 = vector.broadcast %3 : vector<1x256xf32> to vector<8x256xf32>
    %5 = arith.addf %2, %4 : vector<8x256xf32>
    %cst_5 = arith.constant 0.000000e+00 : f32
    %6 = vector.broadcast %cst_5 : f32 to vector<8x256xf32>
    %7 = arith.maximumf %5, %6 : vector<8x256xf32>
    %8 = arith.truncf %7 : vector<8x256xf32> to vector<8x256xbf16>
    %c0_6 = arith.constant 0 : index
    %c0_7 = arith.constant 0 : index
    %9 = vector.load %arg4[%c0_6, %c0_7] : memref<256x128xbf16, #tpu.memory_space<vmem>>, vector<256x128xbf16>
    %cst_8 = arith.constant dense<0.000000e+00> : vector<8x128xf32>
    %10 = tpu.matmul %8, %9, %cst_8 {dimension_numbers = #tpu.dot_dimension_numbers<[1], [0], [0], [1], [0, 0, 1, 1], [], []>} : vector<8x256xbf16>, vector<256x128xbf16>, vector<8x128xf32> -> vector<8x128xf32>
    %c0_9 = arith.constant 0 : index
    %c0_10 = arith.constant 0 : index
    %11 = vector.load %arg5[%c0_9, %c0_10] : memref<1x128xf32, #tpu.memory_space<vmem>>, vector<1x128xf32>
    %12 = vector.broadcast %11 : vector<1x128xf32> to vector<8x128xf32>
    %13 = arith.addf %10, %12 : vector<8x128xf32>
    %c0_11 = arith.constant 0 : index
    %c0_12 = arith.constant 0 : index
    %14 = vector.load %arg6[%c0_11, %c0_12] : memref<8x128xf32, #tpu.memory_space<vmem>>, vector<8x128xf32>
    tpu.vector_store %arg6[%c0_11, %c0_12], %13 {strides = array<i32>} : memref<8x128xf32, #tpu.memory_space<vmem>>, vector<8x128xf32>,
    return
  }
  func.func @transform_0(%arg0: i32) -> (i32, i32) {
    %c0_i32 = arith.constant 0 : i32
    %c0_i32_0 = arith.constant 0 : i32
    return %arg0, %c0_i32 : i32, i32
  }
  func.func @transform_1(%arg0: i32) -> (i32, i32) {
    %c0_i32 = arith.constant 0 : i32
    %c0_i32_0 = arith.constant 0 : i32
    %c0_i32_1 = arith.constant 0 : i32
    return %c0_i32, %c0_i32_0 : i32, i32
  }
  func.func @transform_2(%arg0: i32) -> (i32, i32) {
    %c0_i32 = arith.constant 0 : i32
    %c0_i32_0 = arith.constant 0 : i32
    %c0_i32_1 = arith.constant 0 : i32
    return %c0_i32, %c0_i32_0 : i32, i32
  }
  func.func @transform_3(%arg0: i32) -> (i32, i32) {
    %c0_i32 = arith.constant 0 : i32
    %c0_i32_0 = arith.constant 0 : i32
    %c0_i32_1 = arith.constant 0 : i32
    return %c0_i32, %c0_i32_0 : i32, i32
  }
  func.func @transform_4(%arg0: i32) -> (i32, i32) {
    %c0_i32 = arith.constant 0 : i32
    %c0_i32_0 = arith.constant 0 : i32
    %c0_i32_1 = arith.constant 0 : i32
    return %c0_i32, %c0_i32_0 : i32, i32
  }
  func.func @transform_5(%arg0: i32) -> (i32, i32) {
    %c0_i32 = arith.constant 0 : i32
    %c0_i32_0 = arith.constant 0 : i32
    return %arg0, %c0_i32 : i32, i32
  }
}

</mosaic_0001>

<bundles_post_ra>
// kernel: tpu_custom_call.1
= control target key start
LH: loop header
LB: loop body
LE: loop exit
PB: predicated region body
PF: predicated region fallthrough
CT: control target
= control target key end

     0   :  { %10 = vsyncpa [#allocation3], 0  ;;  %s746_s0 = inlined_call_operand.hbm [shape: bf16[8,128], index: 0, kind: input, shape index: {}]   ;;  %s747_s1 = inlined_call_operand.hbm [shape: bf16[128,256], index: 1, kind: input, shape index: {}]   ;;  %s748_s2 = inlined_call_operand.hbm [shape: f32[1,256], index: 2, kind: input, shape index: {}]   ;;  %s749_s3 = inlined_call_operand.hbm [shape: bf16[256,128], index: 3, kind: input, shape index: {}]   ;;  %s750_s4 = inlined_call_operand.vmem [shape: f32[1,128], index: 4, kind: input, shape index: {}]   ;;  %s751_s5 = inlined_call_operand.hbm [shape: f32[8,128], index: 5, kind: output, shape index: {}]  }
   0x1   :  { %11 = vsyncpa [#allocation6], 0 }
   0x2   :  { %12 = vsyncpa [#allocation9], 0  ;;  %s29_s20 = sshll.u32 %s747_s1, 4  ;;  %s30_s20 = int_to_ptr.hbm [resolvable:$true] %s29_s20 }
   0x3   :  { %13 = vsyncpa [#allocation4], 0  ;;  %s689_s21 = smov [#allocation5]   ;;  %s19_s25 = sshll.u32 %s746_s0, 4  ;;  %s20_s25 = int_to_ptr.hbm [resolvable:$true] %s19_s25 }
   0x4   :  { %s31_s22 = sshll.u32 %s689_s21, 4  ;;  %s690_s26 = smov 128   ;;  %s32_s22 = int_to_ptr.vmem [resolvable:$true] %s31_s22 }
   0x5   :  { %s691_s27 = smov 8   ;;  %s692_s28 = smov [#allocation2]  }
   0x6   :  { %37 = dma.hbm_to_vmem [thread:$0]  %s30_s20, 2048, %s32_s22, [#allocation6], %s690_s26, %s690_s26, %s691_s27  }
   0x7   :  { %s21_s29 = sshll.u32 %s692_s28, 4  ;;  %s43_s7 = sshll.u32 %s748_s2, 4  ;;  %s22_s29 = int_to_ptr.vmem [resolvable:$true] %s21_s29  ;;  %s44_s7 = int_to_ptr.hbm [resolvable:$true] %s43_s7 }
   0x8   :  { %24 = dma.hbm_to_vmem [thread:$0]  %s20_s25, 64, %s22_s29, [#allocation3]  }
   0x9   :  { %s53_s9 = sshll.u32 %s749_s3, 4  ;;  %s693_s10 = smov [#allocation7]   ;;  %s54_s9 = int_to_ptr.hbm [resolvable:$true] %s53_s9 }
   0xa   :  { %s45_s11 = sshll.u32 %s693_s10, 4  ;;  %s694_s0 = smov [#allocation8]   ;;  %s46_s11 = int_to_ptr.vmem [resolvable:$true] %s45_s11 }
   0xb   :  { %48 = dma.hbm_to_vmem [thread:$0]  %s44_s7, 32, %s46_s11, [#allocation6]  }
   0xc   :  { %s55_s12 = sshll.u32 %s694_s0, 4  ;;  %s695_s13 = smov 64   ;;  %s56_s12 = int_to_ptr.vmem [resolvable:$true] %s55_s12 }
   0xd   :  { %s696_s14 = smov 4  }
   0xe   :  { %61 = dma.hbm_to_vmem [thread:$0]  %s54_s9, 2048, %s56_s12, [#allocation9], %s695_s13, %s695_s13, %s696_s14  }
   0xf   :  { %681 = dma.done.wait [#allocation3], 64  }
  0x10   :  { %682 = vsyncadd [#allocation3], 4294967232 }
  0x11   :  { %683 = dma.done.wait [#allocation6], 2080  }
  0x12   :  { %684 = vsyncadd [#allocation6], 4294965216 }
  0x13   :  { %685 = dma.done.wait [#allocation9], 2048  }
  0x14   :  { %686 = vsyncadd [#allocation9], 4294965248  ;;  %v449_v0 = vld [vmem:[#allocation5 + $0x70] sm:$0xf]  ;;  %v534_v1 = vld [vmem:[#allocation5 + $0x74] sm:$0xf0] }
  0x15   :  { %v533_v2 = vld [vmem:[#allocation5 + $0x74] sm:$0xf]  ;;  %v450_v3 = vor.u32 %v534_v1, %v449_v0  ;;  %v451_v4 = vld [vmem:[#allocation5 + $0x78] sm:$0xf0]  ;;  %v441_v5 = vld [vmem:[#allocation5 + $0x60] sm:$0xf] }
  0x16   :  { %v532_v6 = vld [vmem:[#allocation5 + $0x64] sm:$0xf0]  ;;  %v454_v7 = vor.u32 %v533_v2, %v451_v4  ;;  %v531_v8 = vld [vmem:[#allocation5 + $0x64] sm:$0xf]  ;;  %v443_v9 = vld [vmem:[#allocation5 + $0x68] sm:$0xf0] }
  0x17   :  { %183 = vmatpush.bf16.msra.mxu0 %v450_v3  ;;  %v442_v10 = vor.u32 %v532_v6, %v441_v5  ;;  %v446_v11 = vor.u32 %v531_v8, %v443_v9  ;;  %v433_v12 = vld [vmem:[#allocation5 + $0x50] sm:$0xf]  ;;  %v530_v13 = vld [vmem:[#allocation5 + $0x54] sm:$0xf0]  ;;  %v529_v14 = vld [vmem:[#allocation5 + $0x54] sm:$0xf] }
  0x18   :  { %196 = vmatpush.bf16.msra.mxu1 %v454_v7  ;;  %v435_v15 = vld [vmem:[#allocation5 + $0x58] sm:$0xf0]  ;;  %v434_v16 = vor.u32 %v530_v13, %v433_v12  ;;  %v425_v18 = vld [vmem:[#allocation5 + $0x40] sm:$0xf]  ;;  %v528_v19 = vld [vmem:[#allocation5 + $0x44] sm:$0xf0] }
  0x19   :  { %v438_v17 = vor.u32 %v529_v14, %v435_v15  ;;  %v527_v20 = vld [vmem:[#allocation5 + $0x44] sm:$0xf]  ;;  %v427_v21 = vld [vmem:[#allocation5 + $0x48] sm:$0xf0]  ;;  %v426_v22 = vor.u32 %v528_v19, %v425_v18  ;;  %v542_v23 = vld [vmem:[#allocation8 + $0x38] sm:$0xff]  ;;  %s697_s15 = smov [#allocation10]  }
  0x1a   :  { %v550_v24 = vld [vmem:[#allocation8 + $0x78] sm:$0xff]  ;;  %v430_v25 = vor.u32 %v527_v20, %v427_v21  ;;  %v417_v26 = vld [vmem:[#allocation5 + $0x30] sm:$0xf]  ;;  %v525_v28 = vld [vmem:[#allocation5 + $0x34] sm:$0xf]  ;;  %345 = vmatpush.bf16.msra.mxu2 %v542_v23  ;;  %s377_s16 = sshll.u32 %s697_s15, 4  ;;  %s378_s16 = int_to_ptr.vmem [resolvable:$true] %s377_s16 }
  0x1b   :  { %184 = vmatpush.bf16.msra.mxu0 %v442_v10  ;;  %v526_v27 = vld [vmem:[#allocation5 + $0x34] sm:$0xf0]  ;;  %v419_v29 = vld [vmem:[#allocation5 + $0x38] sm:$0xf0]  ;;  %358 = vmatpush.bf16.msra.mxu3 %v550_v24  ;;  %v409_v34 = vld [vmem:[#allocation5 + $0x20] sm:$0xf] }
  0x1c   :  { %197 = vmatpush.bf16.msra.mxu1 %v446_v11  ;;  %v541_v30 = vld [vmem:[#allocation8 + $0x30] sm:$0xff]  ;;  %v418_v32 = vor.u32 %v526_v27, %v417_v26  ;;  %v422_v33 = vor.u32 %v525_v28, %v419_v29  ;;  %v524_v35 = vld [vmem:[#allocation5 + $0x24] sm:$0xf0]  ;;  %v523_v36 = vld [vmem:[#allocation5 + $0x24] sm:$0xf]  ;;  %s379_s19 = sshll.u32 %s751_s5, 4  ;;  %s380_s19 = int_to_ptr.hbm [resolvable:$true] %s379_s19 }
  0x1d   :  { %v549_v31 = vld [vmem:[#allocation8 + $0x70] sm:$0xff]  ;;  %v411_v37 = vld [vmem:[#allocation5 + $0x28] sm:$0xf0]  ;;  %v410_v40 = vor.u32 %v524_v35, %v409_v34  ;;  %v403_v45 = vld [vmem:[#allocation5 + $0x18] sm:$0xf0] }
  0x1e   :  { %346 = vmatpush.bf16.msra.mxu2 %v541_v30  ;;  %v540_v38 = vld [vmem:[#allocation8 + $0x28] sm:$0xff]  ;;  %v414_v41 = vor.u32 %v523_v36, %v411_v37  ;;  %v522_v43 = vld [vmem:[#allocation5 + $0x14] sm:$0xf0]  ;;  %v521_v44 = vld [vmem:[#allocation5 + $0x14] sm:$0xf] }
  0x1f   :  { %185 = vmatpush.bf16.msra.mxu0 %v434_v16  ;;  %359 = vmatpush.bf16.msra.mxu3 %v549_v31  ;;  %v548_v39 = vld [vmem:[#allocation8 + $0x68] sm:$0xff]  ;;  %v539_v46 = vld [vmem:[#allocation8 + $0x20] sm:$0xff]  ;;  %v406_v49 = vor.u32 %v521_v44, %v403_v45  ;;  %v538_v54 = vld [vmem:[#allocation8 + $0x18] sm:$0xff] }
  0x20   :  { %198 = vmatpush.bf16.msra.mxu1 %v438_v17  ;;  %v401_v42 = vld [vmem:[#allocation5 + $0x10] sm:$0xf]  ;;  %v547_v47 = vld [vmem:[#allocation8 + $0x60] sm:$0xff]  ;;  %v395_v53 = vld [vmem:[#allocation5 + $0x8] sm:$0xf0] }
  0x21   :  { %v402_v48 = vor.u32 %v522_v43, %v401_v42  ;;  %v393_v50 = vld [vmem:[#allocation5] sm:$0xf]  ;;  %v520_v51 = vld [vmem:[#allocation5 + $0x4] sm:$0xf0]  ;;  %v519_v52 = vld [vmem:[#allocation5 + $0x4] sm:$0xf] }
  0x22   :  { %347 = vmatpush.bf16.msra.mxu2 %v540_v38  ;;  %v546_v55 = vld [vmem:[#allocation8 + $0x58] sm:$0xff]  ;;  %v394_v56 = vor.u32 %v520_v51, %v393_v50  ;;  %v398_v57 = vor.u32 %v519_v52, %v395_v53  ;;  %v537_v58 = vld [vmem:[#allocation8 + $0x10] sm:$0xff]  ;;  %v536_v61 = vld [vmem:[#allocation8 + $0x8] sm:$0xff] }
  0x23   :  { %186 = vmatpush.bf16.msra.mxu0 %v426_v22  ;;  %360 = vmatpush.bf16.msra.mxu3 %v548_v39  ;;  %v545_v59 = vld [vmem:[#allocation8 + $0x50] sm:$0xff]  ;;  %v80_v60 = vld [vmem:[#allocation2] sm:$0xf]  ;;  %v544_v62 = vld [vmem:[#allocation8 + $0x48] sm:$0xff] }
  0x24   :  { %199 = vmatpush.bf16.msra.mxu1 %v430_v25  ;;  %v535_v63 = vld [vmem:[#allocation8] sm:$0xff]  ;;  %v97_v1 = vld [vmem:[#allocation7] sm:$0x3]  ;;  %v560_v14 = vld [vmem:[%s750_s4] ss:$0 sm:$0xff] }
  0x25   :  { %v543_v0 = vld [vmem:[#allocation8 + $0x40] sm:$0xff]  ;;  %v99_v2 = vperm.slane %v97_v1, 0  ;;  %v100_v3 = vperm.slane %v97_v1, 1 }
  0x26   :  { %348 = vmatpush.bf16.msra.mxu2 %v539_v46 }
  0x27   :  { %187 = vmatpush.bf16.msra.mxu0 %v418_v32  ;;  %361 = vmatpush.bf16.msra.mxu3 %v547_v47 }
  0x28   :  { %200 = vmatpush.bf16.msra.mxu1 %v422_v33 }
  0x2a   :  { %349 = vmatpush.bf16.msra.mxu2 %v538_v54 }
  0x2b   :  { %188 = vmatpush.bf16.msra.mxu0 %v410_v40  ;;  %362 = vmatpush.bf16.msra.mxu3 %v546_v55 }
  0x2c   :  { %201 = vmatpush.bf16.msra.mxu1 %v414_v41 }
  0x2e   :  { %350 = vmatpush.bf16.msra.mxu2 %v537_v58 }
  0x2f   :  { %189 = vmatpush.bf16.msra.mxu0 %v402_v48  ;;  %363 = vmatpush.bf16.msra.mxu3 %v545_v59 }
  0x30   :  { %202 = vmatpush.bf16.msra.mxu1 %v406_v49 }
  0x32   :  { %351 = vmatpush.bf16.msra.mxu2 %v536_v61 }
  0x33   :  { %190 = vmatpush.bf16.msra.mxu0 %v394_v56  ;;  %364 = vmatpush.bf16.msra.mxu3 %v544_v62 }
  0x34   :  { %203 = vmatpush.bf16.msra.mxu1 %v398_v57 }
  0x36   :  { %191 = vmatmul.bf16.vlgmr.msra.gmra.mxu0 %v80_v60  ;;  %352 = vmatpush.bf16.msra.mxu2 %v535_v63 }
  0x37   :  { %204 = vmatmul.bf16.vlgmr.msra.gmra.mxu1 %v80_v60  ;;  %365 = vmatpush.bf16.msra.mxu3 %v543_v0 }
  0xb3   :  { %v192_v4 = vpop.f32.mrf.mxu0 }
  0xb4   :  { %v193_v5 = vadd.f32 %v192_v4, %v99_v2  ;;  %v205_v6 = vpop.f32.mrf.mxu1 }
  0xb5   :  { %v206_v7 = vadd.f32 %v205_v6, %v100_v3 }
  0xb6   :  { %v209_v8 = vmax.f32 %v193_v5, 0.0 }
  0xb7   :  { %v210_v9 = vmax.f32 %v206_v7, 0.0 }
  0xb8   :  { %v211_v10 = vpack.c.bf16 %v209_v8, %v209_v8 }
  0xb9   :  { %v212_v11 = vpack.c.bf16 %v210_v9, %v210_v9 }
  0xba   :  { %353 = vmatmul.bf16.vlgmr.msra.gmra.mxu2 %v211_v10 }
  0xbb   :  { %366 = vmatmul.bf16.vlgmr.msra.gmra.mxu3 %v212_v11  ;;  %v194_v12 = vpop.f32.mrf.mxu0 }
  0xbc   :  { %v207_v13 = vpop.f32.mrf.mxu1 }
 0x13d   :  { %v354_v15 = vpop.f32.mrf.mxu2 }
 0x13e   :  { %v355_v16 = vadd.f32 %v560_v14, %v354_v15  ;;  %v367_v17 = vpop.f32.mrf.mxu3 }
 0x140   :  { %v368_v18 = vadd.f32 %v367_v17, %v355_v16 }
 0x142   :  { %371 = vst [vmem:[#allocation10] sm:$0xff] %v368_v18 }
 0x143   :  { %382 = dma.vmem_to_hbm [thread:$0]  %s378_s16, 128, %s380_s19, [#allocation4]  }
 0x145   :  { %v356_v19 = vpop.f32.mrf.mxu2 }
 0x146   :  { %v369_v20 = vpop.f32.mrf.mxu3 }
 0x147   :  { %687 = dma.done.wait [#allocation4], 128  }
 0x148   :  { %688 = vsyncadd [#allocation4], 4294967168 }
 0x149   :  { %387 = vsyncpa [#allocation3], 1 }
 0x14a   :  { %388 = vsyncpa [#allocation6], 1 }
 0x14b   :  { %389 = vsyncpa [#allocation9], 1 }
 0x14c   :  { %390 = vsyncpa [#allocation4], 1 }

</bundles_post_ra>
